<compile_context>
chip_gen: v7x
topology: tpu7x:2x2x1
jax: 0.10.0
libtpu: 0.0.40
codegen_flags: <defaults>
</compile_context>

<pallas_src>
import jax
import jax.numpy as jnp
from jax.experimental import pallas as pl
from jax.experimental.pallas import tpu as pltpu

STATE_SPACE = 4      # CartPole-v1 observation dim
ACTION_SPACE = 2     # CartPole-v1 action dim
HIDDEN = 128
DROP_P = 0.6
DROP_SCALE = 1.0 / (1.0 - DROP_P)                 # 2.5
KEEP_THRESH = int(round(DROP_P * (1 << 32)))      # keep iff bits >= this (P = 0.4)


def policy_kernel(bits_ref, xt_ref, w1_ref, wd_ref, out_ref):
    # bits_ref: (128, B) uint32 ; xt_ref: (4, B) ; w1_ref: (128, 4) [torch (out,in)]
    # wd_ref:   (128, 1) = (W2[1] - W2[0]).reshape(128, 1) ; out_ref: (2, B)
    xt = xt_ref[...]                      # (4, B)   batch on lanes
    w1 = w1_ref[...]                      # (128, 4) hidden on sublanes

    # ---- l1: Linear(4 -> 128), no bias.  K=4 => 4 VPU FMAs, skip the MXU. ----
    # hT[j, b] = sum_k W1[j, k] * x[b, k]
    hT = (w1[:, 0:1] * xt[0:1, :]
          + w1[:, 1:2] * xt[1:2, :]
          + w1[:, 2:3] * xt[2:3, :]
          + w1[:, 3:4] * xt[3:4, :])      # (128, B)

    # ---- Dropout(p=0.6, training) fused with ReLU (single select) ----
    keep = bits_ref[...] >= jnp.uint32(KEEP_THRESH)            # P(keep) = 0.4
    hT = jnp.where(jnp.logical_and(keep, hT > 0.0), hT * DROP_SCALE, 0.0)

    # ---- l2 (128 -> 2) + Softmax over 2 actions == sigmoid of logit difference ----
    d = jnp.sum(hT * wd_ref[...], axis=0, keepdims=True)       # (1, B)  logit1-logit0
    p1 = 1.0 / (1.0 + jnp.exp(-d))                              # (1, B)
    out_ref[...] = jnp.concatenate([1.0 - p1, p1], axis=0)      # (2, B)


@jax.jit
def policy_forward(x, W1, W2, key):
    """x: (B, 4) f32; W1: (128, 4); W2: (2, 128) (PyTorch (out,in) layouts);
    key: jax PRNG key (vary per step for fresh dropout masks). Returns (B, 2) probs."""
    B = x.shape[0]
    x_t = x.T                                                   # (4, B)
    wd = (W2[1, :] - W2[0, :]).reshape(HIDDEN, 1)               # (128, 1)
    bits = jax.random.bits(key, (HIDDEN, B), dtype=jnp.uint32)  # dropout randomness

    out_t = pl.pallas_call(
        policy_kernel,
        out_shape=jax.ShapeDtypeStruct((ACTION_SPACE, B), jnp.float32),
        in_specs=[
            pl.BlockSpec(memory_space=pltpu.MemorySpace.VMEM),  # bits
            pl.BlockSpec(memory_space=pltpu.MemorySpace.VMEM),  # x^T
            pl.BlockSpec(memory_space=pltpu.MemorySpace.VMEM),  # W1
            pl.BlockSpec(memory_space=pltpu.MemorySpace.VMEM),  # wd
        ],
        out_specs=pl.BlockSpec(memory_space=pltpu.MemorySpace.VMEM),
        # NOTE: at rollout batch sizes a 1-D grid over the lane (batch) axis with
        # TB >= 512 and dimension_semantics=("parallel",) should be added; at B=8
        # the whole problem fits in a single tile.
    )(bits, x_t, W1, wd)
    return out_t.T                                              # (B, 2)


def _reference(x, W1, W2, key):
    """Pure-JAX reference with the same dropout bits (torch semantics)."""
    B = x.shape[0]
    bits = jax.random.bits(key, (HIDDEN, B), dtype=jnp.uint32)
    keep = (bits >= jnp.uint32(KEEP_THRESH)).T                  # (B, 128)
    h = x @ W1.T
    h = jnp.where(keep, h * DROP_SCALE, 0.0)
    h = jnp.maximum(h, 0.0)
    logits = h @ W2.T
    return jax.nn.softmax(logits, axis=-1)


if __name__ == "__main__":
    key = jax.random.PRNGKey(0)
    kx, k1, k2, kdrop = jax.random.split(key, 4)

    B = 8
    x = jax.random.normal(kx, (B, STATE_SPACE), dtype=jnp.float32)

    # Kaiming-uniform-ish bounds like torch.nn.Linear, stored in torch (out, in) layout.
    bound1 = 1.0 / jnp.sqrt(jnp.float32(STATE_SPACE))
    bound2 = 1.0 / jnp.sqrt(jnp.float32(HIDDEN))
    W1 = jax.random.uniform(k1, (HIDDEN, STATE_SPACE), jnp.float32, -bound1, bound1)
    W2 = jax.random.uniform(k2, (ACTION_SPACE, HIDDEN), jnp.float32, -bound2, bound2)

    probs = policy_forward(x, W1, W2, kdrop)
    probs = jax.block_until_ready(probs)

    # Sanity: shape, rows sum to 1, and matches the pure-JAX reference.
    assert probs.shape == (B, ACTION_SPACE)
    assert bool(jnp.all(jnp.abs(jnp.sum(probs, axis=-1) - 1.0) < 1e-5))
    ref = _reference(x, W1, W2, kdrop)
    assert bool(jnp.allclose(probs, ref, rtol=1e-5, atol=1e-6))

    print("KERNEL_OK")
</pallas_src>

<mosaic_0001>
module attributes {stable_mosaic.version = 11 : i64} {
  func.func @policy_kernel(%arg0: memref<128x8xi32, #tpu.memory_space<vmem>>, %arg1: memref<4x8xf32, #tpu.memory_space<vmem>>, %arg2: memref<128x4xf32, #tpu.memory_space<vmem>>, %arg3: memref<128x1xf32, #tpu.memory_space<vmem>>, %arg4: memref<2x8xf32, #tpu.memory_space<vmem>>) attributes {dimension_semantics = [], scalar_prefetch = 0 : i64, scratch_operands = 0 : i64, tpu.core_type = #tpu.core_type<tc>} {
    %c0 = arith.constant 0 : index
    %c0_0 = arith.constant 0 : index
    %0 = vector.load %arg1[%c0, %c0_0] : memref<4x8xf32, #tpu.memory_space<vmem>>, vector<4x8xf32>
    %c0_1 = arith.constant 0 : index
    %c0_2 = arith.constant 0 : index
    %1 = vector.load %arg2[%c0_1, %c0_2] : memref<128x4xf32, #tpu.memory_space<vmem>>, vector<128x4xf32>
    %2 = vector.extract_strided_slice %1 {offsets = [0, 0], sizes = [128, 1], strides = [1, 1]} : vector<128x4xf32> to vector<128x1xf32>
    %3 = vector.extract_strided_slice %0 {offsets = [0, 0], sizes = [1, 8], strides = [1, 1]} : vector<4x8xf32> to vector<1x8xf32>
    %4 = vector.broadcast %2 : vector<128x1xf32> to vector<128x8xf32>
    %5 = vector.broadcast %3 : vector<1x8xf32> to vector<128x8xf32>
    %6 = arith.mulf %4, %5 : vector<128x8xf32>
    %7 = vector.extract_strided_slice %1 {offsets = [0, 1], sizes = [128, 1], strides = [1, 1]} : vector<128x4xf32> to vector<128x1xf32>
    %8 = vector.extract_strided_slice %0 {offsets = [1, 0], sizes = [1, 8], strides = [1, 1]} : vector<4x8xf32> to vector<1x8xf32>
    %9 = vector.broadcast %7 : vector<128x1xf32> to vector<128x8xf32>
    %10 = vector.broadcast %8 : vector<1x8xf32> to vector<128x8xf32>
    %11 = arith.mulf %9, %10 : vector<128x8xf32>
    %12 = arith.addf %6, %11 : vector<128x8xf32>
    %13 = vector.extract_strided_slice %1 {offsets = [0, 2], sizes = [128, 1], strides = [1, 1]} : vector<128x4xf32> to vector<128x1xf32>
    %14 = vector.extract_strided_slice %0 {offsets = [2, 0], sizes = [1, 8], strides = [1, 1]} : vector<4x8xf32> to vector<1x8xf32>
    %15 = vector.broadcast %13 : vector<128x1xf32> to vector<128x8xf32>
    %16 = vector.broadcast %14 : vector<1x8xf32> to vector<128x8xf32>
    %17 = arith.mulf %15, %16 : vector<128x8xf32>
    %18 = arith.addf %12, %17 : vector<128x8xf32>
    %19 = vector.extract_strided_slice %1 {offsets = [0, 3], sizes = [128, 1], strides = [1, 1]} : vector<128x4xf32> to vector<128x1xf32>
    %20 = vector.extract_strided_slice %0 {offsets = [3, 0], sizes = [1, 8], strides = [1, 1]} : vector<4x8xf32> to vector<1x8xf32>
    %21 = vector.broadcast %19 : vector<128x1xf32> to vector<128x8xf32>
    %22 = vector.broadcast %20 : vector<1x8xf32> to vector<128x8xf32>
    %23 = arith.mulf %21, %22 : vector<128x8xf32>
    %24 = arith.addf %18, %23 : vector<128x8xf32>
    %c0_3 = arith.constant 0 : index
    %c0_4 = arith.constant 0 : index
    %25 = vector.load %arg0[%c0_3, %c0_4] : memref<128x8xi32, #tpu.memory_space<vmem>>, vector<128x8xi32>
    %c-1717986918_i32 = arith.constant -1717986918 : i32
    %26 = vector.broadcast %c-1717986918_i32 : i32 to vector<128x8xi32>
    %27 = arith.cmpi uge, %25, %26 : vector<128x8xi32>
    %cst = arith.constant 0.000000e+00 : f32
    %28 = vector.broadcast %cst : f32 to vector<128x8xf32>
    %29 = arith.cmpf ogt, %24, %28 : vector<128x8xf32>
    %30 = arith.andi %27, %29 : vector<128x8xi1>
    %cst_5 = arith.constant 2.500000e+00 : f32
    %31 = vector.broadcast %cst_5 : f32 to vector<128x8xf32>
    %32 = arith.mulf %24, %31 : vector<128x8xf32>
    %cst_6 = arith.constant 0.000000e+00 : f32
    %33 = vector.broadcast %cst_6 : f32 to vector<128x8xf32>
    %34 = arith.select %30, %32, %33 : vector<128x8xi1>, vector<128x8xf32>
    %c0_7 = arith.constant 0 : index
    %c0_8 = arith.constant 0 : index
    %35 = vector.load %arg3[%c0_7, %c0_8] : memref<128x1xf32, #tpu.memory_space<vmem>>, vector<128x1xf32>
    %36 = vector.broadcast %35 : vector<128x1xf32> to vector<128x8xf32>
    %37 = arith.mulf %34, %36 : vector<128x8xf32>
    %cst_9 = arith.constant dense<0.000000e+00> : vector<8xf32>
    %38 = vector.multi_reduction <add>, %37, %cst_9 [0] : vector<128x8xf32> to vector<8xf32>
    %39 = vector.shape_cast %38 : vector<8xf32> to vector<1x8xf32>
    %cst_10 = arith.constant 0.000000e+00 : f32
    %40 = vector.broadcast %cst_10 : f32 to vector<1x8xf32>
    %41 = arith.subf %40, %39 : vector<1x8xf32>
    %42 = math.exp %41 : vector<1x8xf32>
    %cst_11 = arith.constant 1.000000e+00 : f32
    %43 = vector.broadcast %cst_11 : f32 to vector<1x8xf32>
    %44 = arith.addf %43, %42 : vector<1x8xf32>
    %cst_12 = arith.constant 1.000000e+00 : f32
    %45 = vector.broadcast %cst_12 : f32 to vector<1x8xf32>
    %46 = arith.divf %45, %44 : vector<1x8xf32>
    %cst_13 = arith.constant 1.000000e+00 : f32
    %47 = vector.broadcast %cst_13 : f32 to vector<1x8xf32>
    %48 = arith.subf %47, %46 : vector<1x8xf32>
    %49 = tpu.concatenate %48, %46 in 0 : vector<1x8xf32>, vector<1x8xf32> -> vector<2x8xf32>
    %c0_14 = arith.constant 0 : index
    %c0_15 = arith.constant 0 : index
    %50 = vector.load %arg4[%c0_14, %c0_15] : memref<2x8xf32, #tpu.memory_space<vmem>>, vector<2x8xf32>
    tpu.vector_store %arg4[%c0_14, %c0_15], %49 {strides = array<i32>} : memref<2x8xf32, #tpu.memory_space<vmem>>, vector<2x8xf32>,
    return
  }
}

</mosaic_0001>

<bundles_post_ra>
// kernel: policy_forward.1
= control target key start
LH: loop header
LB: loop body
LE: loop exit
PB: predicated region body
PF: predicated region fallthrough
CT: control target
= control target key end

     0   :  { %v764_v2 = vmov 1   ;;  %v765_v3 = vmov 0   ;;  %s1231_s0 = inlined_call_operand.vmem [shape: u32[128,8], index: 0, kind: input, shape index: {}]   ;;  %s1232_s1 = inlined_call_operand.vmem [shape: f32[4,8], index: 1, kind: input, shape index: {}]   ;;  %s1233_s2 = inlined_call_operand.vmem [shape: f32[128,4], index: 2, kind: input, shape index: {}]   ;;  %s1234_s3 = inlined_call_operand.vmem [shape: f32[128,1], index: 3, kind: input, shape index: {}]   ;;  %s1235_s4 = inlined_call_operand.hbm [shape: f32[2,8], index: 4, kind: output, shape index: {}]  }
   0x1   :  { %v797_v0 = vld [vmem:[%s1233_s2 + $0x10] sm:$0xff]  ;;  %v802_v1 = vld [vmem:[%s1233_s2] sm:$0xff]  ;;  %712 = vset.pattern.permute.xlu0 %v764_v2  ;;  %711 = vset.pattern.permute.xlu1 %v765_v3  ;;  %v810_v4 = vld [vmem:[%s1233_s2 + $0x18] sm:$0xff] }
   0x2   :  { %47 = vperm.xlu1 %711, %v797_v0   ;;  %136 = vperm.xlu0 %712, %v802_v1   ;;  %v817_v5 = vld [vmem:[%s1233_s2 + $0x28] sm:$0xff] }
   0x6   :  { %52 = vperm.xlu1 %711, %v810_v4   ;;  %148 = vperm.xlu0 %712, %v810_v4  }
   0x7   :  { %9 = vsyncpa [#allocation3], 0  ;;  %v824_v6 = vld [vmem:[%s1233_s2 + $0x38] sm:$0xff]  ;;  %v831_v7 = vld [vmem:[%s1233_s2 + $0x48] sm:$0xff]  ;;  %v766_v19 = vmov 2   ;;  %v767_v21 = vmov 3   ;;  %v115_v25 = vlaneseq }
   0x8   :  { %v838_v8 = vld [vmem:[%s1233_s2 + $0x58] sm:$0xff]  ;;  %v845_v9 = vld [vmem:[%s1233_s2 + $0x68] sm:$0xff]  ;;  %v23_v12 = vld [vmem:[%s1233_s2 + $0x20] sm:$0xff]  ;;  %vm643_vm8 = vcmask 64512  }
   0x9   :  { %v852_v10 = vld [vmem:[%s1233_s2 + $0x78] sm:$0xff]  ;;  %v20_v11 = vld [vmem:[%s1233_s2 + $0x8] sm:$0xff]  ;;  %v25_v13 = vld [vmem:[%s1233_s2 + $0x30] sm:$0xff]  ;;  %v924_v26 = vshrl.u32 %v115_v25, 7 }
   0xa   :  { %62 = vperm.xlu1 %711, %v817_v5   ;;  %156 = vperm.xlu0 %712, %v817_v5   ;;  %v27_v14 = vld [vmem:[%s1233_s2 + $0x40] sm:$0xff]  ;;  %v29_v15 = vld [vmem:[%s1233_s2 + $0x50] sm:$0xff]  ;;  %v532_v18 = vld [vmem:[%s1234_s3 + $0x8] sm:$0xff] }
   0xb   :  { %v877_v16 = vld [vmem:[%s1233_s2 + $0x60] sm:$0xff]  ;;  %v884_v17 = vld [vmem:[%s1233_s2 + $0x70] sm:$0xff]  ;;  %v534_v24 = vld [vmem:[%s1234_s3 + $0x18] sm:$0xff]  ;;  %v201_v27 = vsub.s32 1, %v924_v26  ;;  %v117_v29 = vsub.s32 0, %v924_v26 }
   0xc   :  { %v535_v20 = vld [vmem:[%s1234_s3 + $0x20] sm:$0xff]  ;;  %v533_v23 = vld [vmem:[%s1234_s3 + $0x10] sm:$0xff]  ;;  %v540_v28 = vld [vmem:[%s1234_s3 + $0x48] sm:$0xff] }
   0xd   :  { %v531_v22 = vld [vmem:[%s1234_s3] sm:$0xff]  ;;  %v536_v34 = vld [vmem:[%s1234_s3 + $0x28] sm:$0xff]  ;;  %v541_v35 = vld [vmem:[%s1234_s3 + $0x50] sm:$0xff] }
   0xe   :  { %72 = vperm.xlu1 %711, %v824_v6   ;;  %164 = vperm.xlu0 %712, %v824_v6   ;;  %v938_v31 = vld [vmem:[%s1232_s1] sm:$0xf]  ;;  %v537_v41 = vld [vmem:[%s1234_s3 + $0x30] sm:$0xff]  ;;  %v546_v48 = vld [vmem:[%s1234_s3 + $0x78] sm:$0xff] }
   0xf   :  { %v942_v33 = vrot.slane %v938_v31, %v201_v27  ;;  %v951_v36 = vrot.slane %v938_v31, %v117_v29  ;;  %v543_v42 = vld [vmem:[%s1234_s3 + $0x60] sm:$0xff]  ;;  %v538_v57 = vld [vmem:[%s1234_s3 + $0x38] sm:$0xff] }
  0x12   :  { %82 = vperm.xlu1 %711, %v831_v7   ;;  %172 = vperm.xlu0 %712, %v831_v7  }
  0x16   :  { %92 = vperm.xlu1 %711, %v838_v8   ;;  %180 = vperm.xlu0 %712, %v838_v8  }
  0x1a   :  { %102 = vperm.xlu1 %711, %v845_v9   ;;  %188 = vperm.xlu0 %712, %v845_v9  }
  0x1e   :  { %112 = vperm.xlu1 %711, %v852_v10   ;;  %196 = vperm.xlu0 %712, %v852_v10  }
  0x22   :  { %713 = vset.pattern.permute.xlu1 %v764_v2  ;;  %714 = vset.pattern.permute.xlu0 %v765_v3 }
  0x23   :  { %140 = vperm.xlu1 %713, %v20_v11   ;;  %37 = vperm.xlu0 %714, %v802_v1  }
  0x27   :  { %144 = vperm.xlu1 %713, %v797_v0   ;;  %42 = vperm.xlu0 %714, %v20_v11  }
  0x2b   :  { %152 = vperm.xlu1 %713, %v23_v12   ;;  %57 = vperm.xlu0 %714, %v23_v12  }
  0x2f   :  { %160 = vperm.xlu1 %713, %v25_v13   ;;  %67 = vperm.xlu0 %714, %v25_v13  }
  0x33   :  { %168 = vperm.xlu1 %713, %v27_v14   ;;  %77 = vperm.xlu0 %714, %v27_v14  }
  0x37   :  { %176 = vperm.xlu1 %713, %v29_v15   ;;  %87 = vperm.xlu0 %714, %v29_v15  }
  0x3b   :  { %184 = vperm.xlu1 %713, %v877_v16   ;;  %97 = vperm.xlu0 %714, %v877_v16  }
  0x3f   :  { %192 = vperm.xlu1 %713, %v884_v17   ;;  %107 = vperm.xlu0 %714, %v884_v17  }
  0x43   :  { %715 = vset.pattern.permute.xlu1 %v766_v19  ;;  %554 = vperm.xlu0 %714, %v532_v18  }
  0x44   :  { %236 = vperm.xlu1 %715, %v802_v1  }
  0x47   :  { %569 = vperm.xlu0 %714, %v535_v20  }
  0x48   :  { %244 = vperm.xlu1 %715, %v797_v0  }
  0x4b   :  { %721 = vset.pattern.permute.xlu0 %v766_v19 }
  0x4c   :  { %248 = vperm.xlu1 %715, %v810_v4   ;;  %240 = vperm.xlu0 %721, %v20_v11  }
  0x50   :  { %256 = vperm.xlu1 %715, %v817_v5   ;;  %252 = vperm.xlu0 %721, %v23_v12  }
  0x54   :  { %264 = vperm.xlu1 %715, %v824_v6   ;;  %260 = vperm.xlu0 %721, %v25_v13  }
  0x58   :  { %272 = vperm.xlu1 %715, %v831_v7   ;;  %268 = vperm.xlu0 %721, %v27_v14  }
  0x5c   :  { %716 = vset.pattern.permute.xlu1 %v767_v21  ;;  %276 = vperm.xlu0 %721, %v29_v15  }
  0x5d   :  { %336 = vperm.xlu1 %716, %v802_v1  }
  0x60   :  { %284 = vperm.xlu0 %721, %v877_v16  }
  0x61   :  { %344 = vperm.xlu1 %716, %v797_v0  }
  0x64   :  { %288 = vperm.xlu0 %721, %v845_v9  }
  0x65   :  { %348 = vperm.xlu1 %716, %v810_v4  }
  0x68   :  { %727 = vset.pattern.permute.xlu0 %v767_v21 }
  0x69   :  { %717 = vset.pattern.permute.xlu1 %v765_v3  ;;  %340 = vperm.xlu0 %727, %v20_v11  }
  0x6a   :  { %549 = vperm.xlu1 %717, %v531_v22  }
  0x6d   :  { %352 = vperm.xlu0 %727, %v23_v12  }
  0x6e   :  { %718 = vset.pattern.permute.xlu1 %v767_v21 }
  0x6f   :  { %356 = vperm.xlu1 %718, %v817_v5  }
  0x71   :  { %360 = vperm.xlu0 %727, %v25_v13  }
  0x73   :  { %719 = vset.pattern.permute.xlu1 %v765_v3 }
  0x74   :  { %559 = vperm.xlu1 %719, %v533_v23  }
  0x75   :  { %372 = vperm.xlu0 %727, %v831_v7   ;;  %v539_v7 = vld [vmem:[%s1234_s3 + $0x40] sm:$0xff] }
  0x78   :  { %564 = vperm.xlu1 %719, %v534_v24  }
  0x79   :  { %376 = vperm.xlu0 %727, %v29_v15  }
  0x7c   :  { %720 = vset.pattern.permute.xlu1 %v767_v21 }
  0x7d   :  { %364 = vperm.xlu1 %720, %v824_v6   ;;  %392 = vperm.xlu0 %727, %v884_v17  }
  0x81   :  { %v933_v30 = vpop.permute.xlu1 %47  ;;  %368 = vperm.xlu1 %720, %v27_v14   ;;  %732 = vset.pattern.permute.xlu0 %v765_v3  ;;  %v137_v32 = vpop.permute.xlu0 %136 }
  0x82   :  { %594 = vperm.xlu0 %732, %v540_v28   ;;  %v203_v18 = vmul.f32 %v942_v33, %v137_v32  ;;  %v121_v28 = vmul.f32 %v951_v36, %v933_v30 }
  0x85   :  { %v53_v37 = vpop.permute.xlu1 %52  ;;  %722 = vset.pattern.permute.xlu1 %v765_v3  ;;  %v149_v38 = vpop.permute.xlu0 %148 }
  0x86   :  { %v122_v39 = vmul.f32 %v951_v36, %v53_v37  ;;  %v206_v40 = vmul.f32 %v942_v33, %v149_v38  ;;  %574 = vperm.xlu1 %722, %v536_v34   ;;  %599 = vperm.xlu0 %732, %v541_v35  }
  0x88   :  { %v962_v43 = vadd.f32 %v206_v40, %v122_v39 }
  0x89   :  { %v63_v44 = vpop.permute.xlu1 %62  ;;  %v157_v45 = vpop.permute.xlu0 %156 }
  0x8a   :  { %v124_v46 = vmul.f32 %v951_v36, %v63_v44  ;;  %v208_v47 = vmul.f32 %v942_v33, %v157_v45  ;;  %579 = vperm.xlu1 %722, %v537_v41   ;;  %609 = vperm.xlu0 %732, %v543_v42  }
  0x8c   :  { %v969_v49 = vadd.f32 %v208_v47, %v124_v46 }
  0x8d   :  { %v73_v50 = vpop.permute.xlu1 %72  ;;  %v165_v51 = vpop.permute.xlu0 %164 }
  0x8e   :  { %v126_v52 = vmul.f32 %v951_v36, %v73_v50  ;;  %v210_v53 = vmul.f32 %v942_v33, %v165_v51  ;;  %723 = vset.pattern.permute.xlu1 %v766_v19  ;;  %624 = vperm.xlu0 %732, %v546_v48  }
  0x8f   :  { %280 = vperm.xlu1 %723, %v838_v8  }
  0x90   :  { %v975_v54 = vadd.f32 %v210_v53, %v126_v52 }
  0x91   :  { %v83_v55 = vpop.permute.xlu1 %82  ;;  %v173_v56 = vpop.permute.xlu0 %172 }
  0x92   :  { %v128_v58 = vmul.f32 %v951_v36, %v83_v55  ;;  %v212_v59 = vmul.f32 %v942_v33, %v173_v56 }
  0x93   :  { %724 = vset.pattern.permute.xlu1 %v765_v3 }
  0x94   :  { %v983_v60 = vadd.f32 %v212_v59, %v128_v58  ;;  %584 = vperm.xlu1 %724, %v538_v57   ;;  %v301_v58 = vsub.s32 2, %v924_v26 }
  0x95   :  { %v93_v61 = vpop.permute.xlu1 %92  ;;  %v181_v62 = vpop.permute.xlu0 %180 }
  0x96   :  { %v130_v63 = vmul.f32 %v951_v36, %v93_v61  ;;  %v214_v0 = vmul.f32 %v942_v33, %v181_v62 }
  0x98   :  { %v987_v1 = vadd.f32 %v214_v0, %v130_v63  ;;  %725 = vset.pattern.permute.xlu1 %v767_v21  ;;  %v544_v63 = vld [vmem:[%s1234_s3 + $0x68] sm:$0xff] }
  0x99   :  { %v103_v2 = vpop.permute.xlu1 %102  ;;  %380 = vperm.xlu1 %725, %v838_v8   ;;  %v189_v4 = vpop.permute.xlu0 %188 }
  0x9a   :  { %v132_v5 = vmul.f32 %v951_v36, %v103_v2  ;;  %v216_v6 = vmul.f32 %v942_v33, %v189_v4 }
  0x9c   :  { %v996_v11 = vadd.f32 %v216_v6, %v132_v5  ;;  %v545_v5 = vld [vmem:[%s1234_s3 + $0x70] sm:$0xff] }
  0x9d   :  { %v113_v12 = vpop.permute.xlu1 %112  ;;  %726 = vset.pattern.permute.xlu1 %v765_v3  ;;  %v197_v13 = vpop.permute.xlu0 %196 }
  0x9e   :  { %v134_v14 = vmul.f32 %v951_v36, %v113_v12  ;;  %v218_v15 = vmul.f32 %v942_v33, %v197_v13  ;;  %589 = vperm.xlu1 %726, %v539_v7  }
  0xa0   :  { %v1001_v8 = vadd.f32 %v218_v15, %v134_v14 }
  0xa2   :  { %v1004_v20 = vpop.permute.xlu1 %140  ;;  %728 = vset.pattern.permute.xlu1 %v767_v21  ;;  %v38_v22 = vpop.permute.xlu0 %37 }
  0xa3   :  { %v119_v23 = vmul.f32 %v951_v36, %v38_v22  ;;  %384 = vperm.xlu1 %728, %v877_v16  }
  0xa5   :  { %v219_v24 = vadd.f32 %v203_v18, %v119_v23 }
  0xa6   :  { %v145_v25 = vpop.permute.xlu1 %144  ;;  %v1009_v27 = vpop.permute.xlu0 %42 }
  0xa7   :  { %v205_v29 = vmul.f32 %v942_v33, %v145_v25  ;;  %729 = vset.pattern.permute.xlu1 %v766_v19 }
  0xa8   :  { %292 = vperm.xlu1 %729, %v884_v17  }
  0xa9   :  { %v221_v32 = vadd.f32 %v205_v29, %v121_v28 }
  0xaa   :  { %v153_v34 = vpop.permute.xlu1 %152  ;;  %v58_v35 = vpop.permute.xlu0 %57 }
  0xab   :  { %v207_v37 = vmul.f32 %v942_v33, %v153_v34  ;;  %v123_v16 = vmul.f32 %v951_v36, %v58_v35 }
  0xac   :  { %730 = vset.pattern.permute.xlu1 %v767_v21 }
  0xad   :  { %v1019_v38 = vadd.f32 %v207_v37, %v123_v16  ;;  %388 = vperm.xlu1 %730, %v845_v9   ;;  %v542_v9 = vld [vmem:[%s1234_s3 + $0x58] sm:$0xff] }
  0xae   :  { %v161_v30 = vpop.permute.xlu1 %160  ;;  %v68_v39 = vpop.permute.xlu0 %67 }
  0xaf   :  { %v209_v40 = vmul.f32 %v942_v33, %v161_v30  ;;  %v125_v41 = vmul.f32 %v951_v36, %v68_v39  ;;  %v401_v30 = vsub.s32 3, %v924_v26 }
  0xb1   :  { %v1024_v17 = vadd.f32 %v209_v40, %v125_v41  ;;  %731 = vset.pattern.permute.xlu1 %v766_v19 }
  0xb2   :  { %v169_v42 = vpop.permute.xlu1 %168  ;;  %296 = vperm.xlu1 %731, %v852_v10   ;;  %v78_v44 = vpop.permute.xlu0 %77 }
  0xb3   :  { %v211_v45 = vmul.f32 %v942_v33, %v169_v42  ;;  %v127_v46 = vmul.f32 %v951_v36, %v78_v44 }
  0xb5   :  { %v1033_v47 = vadd.f32 %v211_v45, %v127_v46 }
  0xb6   :  { %v177_v48 = vpop.permute.xlu1 %176  ;;  %733 = vset.pattern.permute.xlu1 %v765_v3  ;;  %v88_v50 = vpop.permute.xlu0 %87 }
  0xb7   :  { %v213_v19 = vmul.f32 %v942_v33, %v177_v48  ;;  %v129_v51 = vmul.f32 %v951_v36, %v88_v50  ;;  %604 = vperm.xlu1 %733, %v542_v9   ;;  %v120_v9 = vmul.f32 %v951_v36, %v1009_v27  ;;  %v436_v27 = vld [vmem:[%s1231_s0 + $0x8] sm:$0xff] }
  0xb8   :  { %vm452_vm3 = vcmp.ge.u32.totalorder %v436_v27, 2576980378 }
  0xb9   :  { %v1038_v52 = vadd.f32 %v213_v19, %v129_v51  ;;  %v204_v19 = vmul.f32 %v942_v33, %v1004_v20 }
  0xba   :  { %v185_v53 = vpop.permute.xlu1 %184  ;;  %v98_v55 = vpop.permute.xlu0 %97 }
  0xbb   :  { %v215_v56 = vmul.f32 %v942_v33, %v185_v53  ;;  %v131_v57 = vmul.f32 %v951_v36, %v98_v55  ;;  %734 = vset.pattern.permute.xlu1 %v767_v21  ;;  %v1054_v21 = vrot.slane %v938_v31, %v301_v58  ;;  %v220_v53 = vadd.f32 %v204_v19, %v120_v9 }
  0xbc   :  { %396 = vperm.xlu1 %734, %v852_v10  }
  0xbd   :  { %v1045_v59 = vadd.f32 %v215_v56, %v131_v57 }
  0xbe   :  { %v193_v61 = vpop.permute.xlu1 %192  ;;  %v108_v62 = vpop.permute.xlu0 %107 }
  0xbf   :  { %v217_v0 = vmul.f32 %v942_v33, %v193_v61  ;;  %v133_v2 = vmul.f32 %v951_v36, %v108_v62 }
  0xc0   :  { %735 = vset.pattern.permute.xlu1 %v765_v3 }
  0xc1   :  { %v1056_v10 = vadd.f32 %v217_v0, %v133_v2  ;;  %614 = vperm.xlu1 %735, %v544_v63   ;;  %v437_v63 = vld [vmem:[%s1231_s0 + $0x10] sm:$0xff] }
  0xc2   :  { %v1058_v4 = vpop.permute.xlu0 %554  ;;  %vm453_vm4 = vcmp.ge.u32.totalorder %v437_v63, 2576980378 }
  0xc3   :  { %v237_v6 = vpop.permute.xlu1 %236 }
  0xc4   :  { %v303_v7 = vmul.f32 %v1054_v21, %v237_v6  ;;  %v439_v6 = vld [vmem:[%s1231_s0 + $0x20] sm:$0xff] }
  0xc5   :  { %619 = vperm.xlu1 %735, %v545_v5   ;;  %vm455_vm9 = vcmp.ge.u32.totalorder %v439_v6, 2576980378 }
  0xc6   :  { %v319_v12 = vadd.f32 %v303_v7, %v219_v24  ;;  %v1064_v13 = vpop.permute.xlu0 %569 }
  0xc7   :  { %v245_v3 = vpop.permute.xlu1 %244 }
  0xc8   :  { %v305_v14 = vmul.f32 %v1054_v21, %v245_v3 }
  0xca   :  { %v321_v15 = vadd.f32 %v305_v14, %v221_v32 }
  0xcb   :  { %v249_v18 = vpop.permute.xlu1 %248  ;;  %v241_v22 = vpop.permute.xlu0 %240 }
  0xcc   :  { %v306_v23 = vmul.f32 %v1054_v21, %v249_v18  ;;  %v304_v51 = vmul.f32 %v1054_v21, %v241_v22 }
  0xce   :  { %v322_v25 = vadd.f32 %v306_v23, %v962_v43  ;;  %v320_v58 = vadd.f32 %v304_v51, %v220_v53 }
  0xcf   :  { %v257_v28 = vpop.permute.xlu1 %256  ;;  %v253_v29 = vpop.permute.xlu0 %252 }
  0xd0   :  { %v308_v34 = vmul.f32 %v1054_v21, %v257_v28  ;;  %v307_v55 = vmul.f32 %v1054_v21, %v253_v29 }
  0xd2   :  { %v1071_v35 = vadd.f32 %v308_v34, %v969_v49  ;;  %v1087_v49 = vrot.slane %v938_v31, %v401_v30  ;;  %v323_v2 = vadd.f32 %v307_v55, %v1019_v38  ;;  %v438_v38 = vld [vmem:[%s1231_s0 + $0x18] sm:$0xff] }
  0xd3   :  { %v265_v24 = vpop.permute.xlu1 %264  ;;  %v1073_v37 = vpop.permute.xlu0 %260  ;;  %vm454_vm12 = vcmp.ge.u32.totalorder %v438_v38, 2576980378 }
  0xd4   :  { %v310_v16 = vmul.f32 %v1054_v21, %v265_v24  ;;  %v309_v51 = vmul.f32 %v1054_v21, %v1073_v37 }
  0xd6   :  { %v1077_v32 = vadd.f32 %v310_v16, %v975_v54 }
  0xd7   :  { %v273_v39 = vpop.permute.xlu1 %272  ;;  %v1080_v40 = vpop.permute.xlu0 %268 }
  0xd8   :  { %v312_v43 = vmul.f32 %v1054_v21, %v273_v39 }
  0xda   :  { %v1084_v41 = vadd.f32 %v312_v43, %v983_v60  ;;  %v435_v60 = vld [vmem:[%s1231_s0] sm:$0xff] }
  0xdb   :  { %v1089_v42 = vpop.permute.xlu0 %276  ;;  %vm451_vm0 = vcmp.ge.u32.totalorder %v435_v60, 2576980378 }
  0xdc   :  { %v337_v44 = vpop.permute.xlu1 %336 }
  0xdd   :  { %v403_v45 = vmul.f32 %v1087_v49, %v337_v44 }
  0xdf   :  { %v1092_v54 = vpop.permute.xlu0 %284  ;;  %v419_v26 = vadd.f32 %v403_v45, %v319_v12 }
  0xe0   :  { %v345_v46 = vpop.permute.xlu1 %344 }
  0xe1   :  { %v405_v31 = vmul.f32 %v1087_v49, %v345_v46  ;;  %vm467_vm1 = vcmp.gt.f32.partialorder %v419_v26, 0.0  ;;  %v499_v57 = vmul.f32 2.5, %v419_v26 }
  0xe2   :  { %vm1111_vm2 = vmand %vm451_vm0, %vm467_vm1 }
  0xe3   :  { %v1096_v48 = vpop.permute.xlu0 %288  ;;  %v421_v36 = vadd.f32 %v405_v31, %v321_v15  ;;  %v515_v5 = vsel %vm1111_vm2, %v499_v57, 0.0  ;;  %v440_v57 = vld [vmem:[%s1231_s0 + $0x28] sm:$0xff] }
  0xe4   :  { %v349_v50 = vpop.permute.xlu1 %348  ;;  %vm456_vm0 = vcmp.ge.u32.totalorder %v440_v57, 2576980378 }
  0xe5   :  { %v406_v61 = vmul.f32 %v1087_v49, %v349_v50  ;;  %vm469_vm5 = vcmp.gt.f32.partialorder %v421_v36, 0.0  ;;  %v501_v28 = vmul.f32 2.5, %v421_v36 }
  0xe6   :  { %vm485_vm10 = vmand %vm453_vm4, %vm469_vm5 }
  0xe7   :  { %v422_v12 = vadd.f32 %v406_v61, %v322_v25  ;;  %v517_v39 = vsel %vm485_vm10, %v501_v28, 0.0 }
  0xe8   :  { %v341_v56 = vpop.permute.xlu0 %340 }
  0xe9   :  { %v404_v62 = vmul.f32 %v1087_v49, %v341_v56  ;;  %v550_v33 = vpop.permute.xlu1 %549  ;;  %vm470_vm13 = vcmp.gt.f32.partialorder %v422_v12, 0.0  ;;  %v502_v43 = vmul.f32 2.5, %v422_v12 }
  0xea   :  { %v627_v15 = vmul.f32 %v550_v33, %v515_v5  ;;  %vm486_vm15 = vmand %vm454_vm12, %vm470_vm13 }
  0xeb   :  { %v420_v0 = vadd.f32 %v404_v62, %v320_v58  ;;  %v518_v60 = vsel %vm486_vm15, %v502_v43, 0.0 }
  0xec   :  { %v353_v7 = vpop.permute.xlu0 %352  ;;  %v644_v34 = vsel %vm643_vm8, %v627_v15, 0.0 }
  0xed   :  { %vm468_vm6 = vcmp.gt.f32.partialorder %v420_v0, 0.0  ;;  %v500_v3 = vmul.f32 2.5, %v420_v0  ;;  %v407_v14 = vmul.f32 %v1087_v49, %v353_v7 }
  0xee   :  { %vm484_vm7 = vmand %vm452_vm3, %vm468_vm6  ;;  %v357_v18 = vpop.permute.xlu1 %356 }
  0xef   :  { %v516_v22 = vsel %vm484_vm7, %v500_v3, 0.0  ;;  %v423_v23 = vadd.f32 %v407_v14, %v323_v2  ;;  %v408_v46 = vmul.f32 %v1087_v49, %v357_v18  ;;  %v442_v18 = vld [vmem:[%s1231_s0 + $0x38] sm:$0xff] }
  0xf0   :  { %v628_v29 = vmul.f32 %v1058_v4, %v516_v22  ;;  %v361_v50 = vpop.permute.xlu0 %360  ;;  %vm458_vm6 = vcmp.ge.u32.totalorder %v442_v18, 2576980378  ;;  %v446_v18 = vld [vmem:[%s1231_s0 + $0x58] sm:$0xff] }
  0xf1   :  { %vm471_vm11 = vcmp.gt.f32.partialorder %v423_v23, 0.0  ;;  %v503_v25 = vmul.f32 2.5, %v423_v23  ;;  %v424_v55 = vadd.f32 %v408_v46, %v1071_v35  ;;  %v409_v36 = vmul.f32 %v1087_v49, %v361_v50  ;;  %v441_v35 = vld [vmem:[%s1231_s0 + $0x30] sm:$0xff] }
  0xf2   :  { %v645_v24 = vsel %vm643_vm8, %v628_v29, 0.0  ;;  %vm487_vm14 = vmand %vm455_vm9, %vm471_vm11  ;;  %vm457_vm3 = vcmp.ge.u32.totalorder %v441_v35, 2576980378  ;;  %v311_v23 = vmul.f32 %v1054_v21, %v1080_v40 }
  0xf3   :  { %v646_v16 = vadd.f32 %v645_v24, %v644_v34  ;;  %v560_v30 = vpop.permute.xlu1 %559  ;;  %v519_v45 = vsel %vm487_vm14, %v503_v25, 0.0  ;;  %vm472_vm1 = vcmp.gt.f32.partialorder %v424_v55, 0.0  ;;  %v504_v33 = vmul.f32 2.5, %v424_v55 }
  0xf4   :  { %v629_v44 = vmul.f32 %v560_v30, %v517_v39  ;;  %v631_v31 = vmul.f32 %v1064_v13, %v519_v45  ;;  %v325_v13 = vadd.f32 %v309_v51, %v1024_v17  ;;  %vm488_vm2 = vmand %vm456_vm0, %vm472_vm1  ;;  %v373_v20 = vpop.permute.xlu0 %372  ;;  %v313_v25 = vmul.f32 %v1054_v21, %v1089_v42  ;;  %v444_v45 = vld [vmem:[%s1231_s0 + $0x48] sm:$0xff] }
  0xf5   :  { %v520_v2 = vsel %vm488_vm2, %v504_v33, 0.0  ;;  %v412_v29 = vmul.f32 %v1087_v49, %v373_v20  ;;  %vm460_vm10 = vcmp.ge.u32.totalorder %v444_v45, 2576980378  ;;  %v315_v20 = vmul.f32 %v1054_v21, %v1092_v54 }
  0xf6   :  { %v647_v4 = vsel %vm643_vm8, %v629_v44, 0.0  ;;  %v651_v58 = vsel %vm643_vm8, %v631_v31, 0.0  ;;  %v425_v62 = vadd.f32 %v409_v36, %v325_v13  ;;  %v329_v43 = vadd.f32 %v313_v25, %v1038_v52 }
  0xf7   :  { %v648_v26 = vadd.f32 %v647_v4, %v646_v16  ;;  %v565_v9 = vpop.permute.xlu1 %564  ;;  %v327_v16 = vadd.f32 %v311_v23, %v1033_v47  ;;  %v428_v40 = vadd.f32 %v412_v29, %v1084_v41  ;;  %v443_v47 = vld [vmem:[%s1231_s0 + $0x40] sm:$0xff]  ;;  %v445_v41 = vld [vmem:[%s1231_s0 + $0x50] sm:$0xff] }
  0xf8   :  { %v630_v19 = vmul.f32 %v565_v9, %v518_v60  ;;  %vm473_vm4 = vcmp.gt.f32.partialorder %v425_v62, 0.0  ;;  %v505_v5 = vmul.f32 2.5, %v425_v62  ;;  %v377_v38 = vpop.permute.xlu0 %376  ;;  %vm459_vm12 = vcmp.ge.u32.totalorder %v443_v47, 2576980378 }
  0xf9   :  { %vm489_vm5 = vmand %vm457_vm3, %vm473_vm4  ;;  %v413_v30 = vmul.f32 %v1087_v49, %v377_v38  ;;  %vm476_vm11 = vcmp.gt.f32.partialorder %v428_v40, 0.0  ;;  %v508_v50 = vmul.f32 2.5, %v428_v40  ;;  %vm461_vm15 = vcmp.ge.u32.totalorder %v445_v41, 2576980378 }
  0xfa   :  { %v649_v53 = vsel %vm643_vm8, %v630_v19, 0.0  ;;  %v521_v14 = vsel %vm489_vm5, %v505_v5, 0.0  ;;  %vm492_vm14 = vmand %vm460_vm10, %vm476_vm11  ;;  %vm462_vm5 = vcmp.ge.u32.totalorder %v446_v18, 2576980378 }
  0xfb   :  { %v650_v27 = vadd.f32 %v649_v53, %v648_v26  ;;  %v429_v26 = vadd.f32 %v413_v30, %v329_v43  ;;  %v524_v53 = vsel %vm492_vm14, %v508_v50, 0.0 }
  0xfc   :  { %v365_v56 = vpop.permute.xlu1 %364  ;;  %v1164_v39 = vpop.permute.xlu0 %392 }
  0xfd   :  { %v652_v61 = vadd.f32 %v651_v58, %v650_v27  ;;  %v410_v63 = vmul.f32 %v1087_v49, %v365_v56  ;;  %vm477_vm0 = vcmp.gt.f32.partialorder %v429_v26, 0.0  ;;  %v509_v51 = vmul.f32 2.5, %v429_v26 }
  0xfe   :  { %vm493_vm2 = vmand %vm461_vm15, %vm477_vm0  ;;  %v417_v30 = vmul.f32 %v1087_v49, %v1164_v39 }
  0xff   :  { %v426_v7 = vadd.f32 %v410_v63, %v1077_v32  ;;  %v525_v58 = vsel %vm493_vm2, %v509_v51, 0.0 }
 0x100   :  { %v369_v37 = vpop.permute.xlu1 %368 }
 0x101   :  { %vm474_vm7 = vcmp.gt.f32.partialorder %v426_v7, 0.0  ;;  %v411_v34 = vmul.f32 %v1087_v49, %v369_v37  ;;  %v506_v24 = vmul.f32 2.5, %v426_v7  ;;  %v595_v9 = vpop.permute.xlu0 %594 }
 0x102   :  { %vm490_vm9 = vmand %vm458_vm6, %vm474_vm7  ;;  %v636_v56 = vmul.f32 %v595_v9, %v524_v53 }
 0x103   :  { %v427_v44 = vadd.f32 %v411_v34, %v327_v16  ;;  %v522_v4 = vsel %vm490_vm9, %v506_v24, 0.0 }
 0x104   :  { %v661_v37 = vsel %vm643_vm8, %v636_v56, 0.0 }
 0x105   :  { %v575_v0 = vpop.permute.xlu1 %574  ;;  %vm475_vm13 = vcmp.gt.f32.partialorder %v427_v44, 0.0  ;;  %v507_v19 = vmul.f32 2.5, %v427_v44  ;;  %v600_v55 = vpop.permute.xlu0 %599  ;;  %v448_v44 = vld [vmem:[%s1231_s0 + $0x68] sm:$0xff] }
 0x106   :  { %v632_v17 = vmul.f32 %v575_v0, %v520_v2  ;;  %vm491_vm1 = vmand %vm459_vm12, %vm475_vm13  ;;  %v637_v13 = vmul.f32 %v600_v55, %v525_v58  ;;  %vm464_vm10 = vcmp.ge.u32.totalorder %v448_v44, 2576980378 }
 0x107   :  { %v523_v27 = vsel %vm491_vm1, %v507_v19, 0.0 }
 0x108   :  { %v653_v6 = vsel %vm643_vm8, %v632_v17, 0.0  ;;  %v663_v63 = vsel %vm643_vm8, %v637_v13, 0.0 }
 0x109   :  { %v654_v12 = vadd.f32 %v653_v6, %v652_v61  ;;  %v580_v3 = vpop.permute.xlu1 %579  ;;  %v331_v6 = vadd.f32 %v315_v20, %v1045_v59  ;;  %v316_v59 = vmul.f32 %v1054_v21, %v1096_v48 }
 0x10a   :  { %v633_v15 = vmul.f32 %v580_v3, %v521_v14  ;;  %v447_v14 = vld [vmem:[%s1231_s0 + $0x60] sm:$0xff] }
 0x10b   :  { %vm463_vm3 = vcmp.ge.u32.totalorder %v447_v14, 2576980378  ;;  %v332_v29 = vadd.f32 %v316_v59, %v996_v11 }
 0x10c   :  { %v655_v22 = vsel %vm643_vm8, %v633_v15, 0.0 }
 0x10d   :  { %v656_v28 = vadd.f32 %v655_v22, %v654_v12 }
 0x10e   :  { %v281_v32 = vpop.permute.xlu1 %280 }
 0x10f   :  { %v314_v2 = vmul.f32 %v1054_v21, %v281_v32  ;;  %v610_v32 = vpop.permute.xlu0 %609 }
 0x111   :  { %v330_v12 = vadd.f32 %v314_v2, %v987_v1 }
 0x113   :  { %v585_v42 = vpop.permute.xlu1 %584  ;;  %v625_v55 = vpop.permute.xlu0 %624 }
 0x114   :  { %v634_v46 = vmul.f32 %v585_v42, %v522_v4 }
 0x116   :  { %v657_v52 = vsel %vm643_vm8, %v634_v46, 0.0  ;;  %v450_v46 = vld [vmem:[%s1231_s0 + $0x78] sm:$0xff] }
 0x117   :  { %v658_v60 = vadd.f32 %v657_v52, %v656_v28  ;;  %vm466_vm15 = vcmp.ge.u32.totalorder %v450_v46, 2576980378 }
 0x118   :  { %v381_v31 = vpop.permute.xlu1 %380 }
 0x119   :  { %v414_v7 = vmul.f32 %v1087_v49, %v381_v31 }
 0x11b   :  { %v430_v54 = vadd.f32 %v414_v7, %v330_v12 }
 0x11d   :  { %v590_v36 = vpop.permute.xlu1 %589  ;;  %vm478_vm6 = vcmp.gt.f32.partialorder %v430_v54, 0.0  ;;  %v510_v28 = vmul.f32 2.5, %v430_v54 }
 0x11e   :  { %v635_v57 = vmul.f32 %v590_v36, %v523_v27  ;;  %vm494_vm9 = vmand %vm462_vm5, %vm478_vm6 }
 0x11f   :  { %v526_v48 = vsel %vm494_vm9, %v510_v28, 0.0 }
 0x120   :  { %v659_v61 = vsel %vm643_vm8, %v635_v57, 0.0 }
 0x121   :  { %v660_v62 = vadd.f32 %v659_v61, %v658_v60 }
 0x122   :  { %v385_v35 = vpop.permute.xlu1 %384 }
 0x123   :  { %v662_v33 = vadd.f32 %v661_v37, %v660_v62  ;;  %v415_v5 = vmul.f32 %v1087_v49, %v385_v35 }
 0x125   :  { %v664_v0 = vadd.f32 %v663_v63, %v662_v33  ;;  %v431_v3 = vadd.f32 %v415_v5, %v331_v6 }
 0x127   :  { %v293_v17 = vpop.permute.xlu1 %292  ;;  %vm479_vm4 = vcmp.gt.f32.partialorder %v431_v3, 0.0  ;;  %v511_v38 = vmul.f32 2.5, %v431_v3 }
 0x128   :  { %v317_v1 = vmul.f32 %v1054_v21, %v293_v17  ;;  %vm495_vm7 = vmand %vm463_vm3, %vm479_vm4  ;;  %vm688_vm3 = vcmask 1040384   ;;  %vm690_vm4 = vcmask 58368  }
 0x129   :  { %v527_v25 = vsel %vm495_vm7, %v511_v38, 0.0 }
 0x12a   :  { %v333_v34 = vadd.f32 %v317_v1, %v1056_v10  ;;  %v639_v40 = vmul.f32 %v610_v32, %v527_v25  ;;  %v449_v10 = vld [vmem:[%s1231_s0 + $0x70] sm:$0xff]  ;;  %s768_s0 = smov [#allocation2]  }
 0x12b   :  { %vm465_vm13 = vcmp.ge.u32.totalorder %v449_v10, 2576980378  ;;  %s698_s28 = sshll.u32 %s768_s0, 4  ;;  %s699_s28 = int_to_ptr.vmem [resolvable:$true] %s698_s28 }
 0x12c   :  { %v389_v15 = vpop.permute.xlu1 %388  ;;  %v433_v42 = vadd.f32 %v417_v30, %v333_v34  ;;  %v667_v39 = vsel %vm643_vm8, %v639_v40, 0.0  ;;  %s740_s29 = scalar_lea.vmem %s699_s28, 32  ;;  %p745_p1 = scmp.lt.s32.totalorder %s699_s28, %s699_s28 }
 0x12d   :  { %v416_v23 = vmul.f32 %v1087_v49, %v389_v15  ;;  %p741_p0 = scmp.ne.s32.totalorder %s699_s28, %s740_s29  ;;  %p746_p2 = scmp.lt.s32.totalorder %s740_s29, %s740_s29 }
 0x12e   :  { %vm481_vm14 = vcmp.gt.f32.partialorder %v433_v42, 0.0  ;;  %v513_v19 = vmul.f32 2.5, %v433_v42 }
 0x12f   :  { %v432_v24 = vadd.f32 %v416_v23, %v332_v29  ;;  %vm497_vm1 = vmand %vm465_vm13, %vm481_vm14  ;;  %p747_p3 = por %p746_p2, %p745_p1 }
 0x130   :  { %v529_v27 = vsel %vm497_vm1, %v513_v19, 0.0 }
 0x131   :  { %v297_v22 = vpop.permute.xlu1 %296  ;;  %vm480_vm11 = vcmp.gt.f32.partialorder %v432_v24, 0.0  ;;  %v512_v41 = vmul.f32 2.5, %v432_v24  ;;  %p748_p4 = pnand %p747_p3, %p741_p0 }
 0x132   :  { %v318_v45 = vmul.f32 %v1054_v21, %v297_v22  ;;  %vm496_vm12 = vmand %vm464_vm10, %vm480_vm11 }
 0x133   :  { %v528_v50 = vsel %vm496_vm12, %v512_v41, 0.0 }
 0x134   :  { %v334_v26 = vadd.f32 %v318_v45, %v1001_v8 }
 0x136   :  { %v605_v16 = vpop.permute.xlu1 %604 }
 0x137   :  { %v638_v43 = vmul.f32 %v605_v16, %v526_v48 }
 0x139   :  { %v665_v11 = vsel %vm643_vm8, %v638_v43, 0.0 }
 0x13a   :  { %v666_v4 = vadd.f32 %v665_v11, %v664_v0 }
 0x13b   :  { %v397_v47 = vpop.permute.xlu1 %396 }
 0x13c   :  { %v418_v21 = vmul.f32 %v1087_v49, %v397_v47  ;;  %v668_v52 = vadd.f32 %v667_v39, %v666_v4 }
 0x13e   :  { %v434_v9 = vadd.f32 %v418_v21, %v334_v26 }
 0x140   :  { %vm482_vm0 = vcmp.gt.f32.partialorder %v434_v9, 0.0  ;;  %v514_v60 = vmul.f32 2.5, %v434_v9  ;;  %v615_v31 = vpop.permute.xlu1 %614 }
 0x141   :  { %vm498_vm2 = vmand %vm466_vm15, %vm482_vm0  ;;  %v640_v51 = vmul.f32 %v615_v31, %v528_v50 }
 0x142   :  { %v530_v53 = vsel %vm498_vm2, %v514_v60, 0.0 }
 0x143   :  { %v669_v8 = vsel %vm643_vm8, %v640_v51, 0.0  ;;  %v642_v56 = vmul.f32 %v625_v55, %v530_v53 }
 0x144   :  { %v670_v49 = vadd.f32 %v669_v8, %v668_v52  ;;  %v620_v36 = vpop.permute.xlu1 %619 }
 0x145   :  { %v641_v57 = vmul.f32 %v620_v36, %v529_v27  ;;  %v673_v61 = vsel %vm643_vm8, %v642_v56, 0.0 }
 0x147   :  { %v671_v58 = vsel %vm643_vm8, %v641_v57, 0.0 }
 0x148   :  { %v672_v13 = vadd.f32 %v671_v58, %v670_v49 }
 0x14a   :  { %v674_v62 = vadd.f32 %v673_v61, %v672_v13 }
 0x14c   :  { %v675_v37 = vrot.slane %v674_v62, 4 }
 0x14e   :  { %v676_v35 = vadd.f32 %v675_v37, %v674_v62 }
 0x150   :  { %v677_v33 = vrot.slane %v676_v35, 2 }
 0x152   :  { %v678_v20 = vadd.f32 %v677_v33, %v676_v35 }
 0x154   :  { %v679_v63 = vrot.slane %v678_v20, 1 }
 0x156   :  { %v680_v0 = vadd.f32 %v679_v63, %v678_v20 }
 0x158   :  { %v681_v2 = vsub.f32 0.0, %v680_v0 }
 0x15a   :  { %v682_v5 = vmul.f32 1.442695, %v681_v2 }
 0x15c   :  { %736 = vpow2.f32 %v682_v5 }
 0x166   :  { %v737_v17 = vpop.eup %736 }
 0x167   :  { %v684_v6 = vadd.f32 1.0, %v737_v17 }
 0x169   :  { %738 = vrcp.f32 %v684_v6 }
 0x173   :  { %v739_v7 = vpop.eup %738 }
 0x174   :  { %v687_v12 = vsub.f32 1.0, %v739_v7 }
 0x176   :  { %v689_v3 = vsel %vm688_vm3, %v687_v12, %v739_v7 }
 0x177   :  { %691 = vst.msk [vmem:[#allocation2] sm:$0x3] %vm690_vm4, %v689_v3 }
 0x178   :  { %751 = shalt.err (!%p748_p4)
}
 0x179   :  { %s752_s6 = scalar_lea.hbm %s1235_s4, 32 }
 0x17a   :  { %p753_p5 = scmp.ne.s32.totalorder %s1235_s4, %s752_s6  ;;  %p756_p6 = scmp.lt.u32.totalorder %s752_s6, %s1235_s4 }
 0x17c   :  { %p758_p7 = pnand %p756_p6, %p753_p5 }
 0x17e   :  { %761 = shalt.err (!%p758_p7)
}
 0x17f   :  { %701 = dma.vmem_to_hbm [thread:$0]  %s699_s28, 32, %s1235_s4, [#allocation3]  }
 0x180   :  { %762 = dma.done.wait [#allocation3], 32  }
 0x181   :  { %763 = vsyncadd [#allocation3], 4294967264 }
 0x182   :  { %705 = vsyncpa [#allocation3], 1 }

</bundles_post_ra>
